<compile_context>
chip_gen: v6e
topology: v6e:2x2x1
jax: 0.10.0
libtpu: 0.0.40
codegen_flags: <defaults>
</compile_context>

<pallas_src>
import functools

import jax
import jax.numpy as jnp
from jax import lax
from jax.experimental import pallas as pl
from jax.experimental.pallas import tpu as pltpu


_LANE_CHUNK = 512  # lanes processed per inner step; bounds live vregs


def _dw_shift_kernel(x_ref, w_ref, m_ref, o_ref, xpad_ref, *, H, W, K, pad_f):
    """One grid step: a (tR, H*W) block of independent (n, c) rows.

    x_ref   : (tR, H*W)            input rows, flattened spatial on lanes
    w_ref   : (tR, K*K)            merged depthwise weights, one row per (n, c)
    m_ref   : (K, H*W)             column-validity mask per horizontal offset dw
    o_ref   : (tR, H*W)            output rows
    xpad_ref: (tR, H*W + 2*pad_f)  VMEM staging buffer with zero halo strips
    """
    HW = H * W
    pad = K // 2
    t_rows = xpad_ref.shape[0]

    # Zero the halo strips.  Re-done every step: grid steps may be reordered /
    # sharded across TensorCores, so no cross-step scratch state is carried.
    if pad_f:
        zeros_strip = jnp.zeros((t_rows, pad_f), xpad_ref.dtype)
        xpad_ref[:, pl.ds(0, pad_f)] = zeros_strip
        xpad_ref[:, pl.ds(pad_f + HW, pad_f)] = zeros_strip

    # Stage this block into the interior of the halo scratch (VMEM->VMEM,
    # lane-aligned store, chunked to keep live ranges small).
    for c0 in range(0, HW, _LANE_CHUNK):
        cw = min(_LANE_CHUNK, HW - c0)
        xpad_ref[:, pl.ds(pad_f + c0, cw)] = x_ref[:, pl.ds(c0, cw)]

    # KxK taps: per-tap ref-indexed loads at static lane offsets.  A spatial
    # shift of (dh, dw) is a shift of dh*W + dw along the flattened lane axis;
    # the zero halo handles the H borders, the per-dw column mask kills the
    # wrap-around into the neighbouring image row at the W borders.
    for c0 in range(0, HW, _LANE_CHUNK):
        cw = min(_LANE_CHUNK, HW - c0)
        acc = None
        for kw in range(K):
            dw = kw - pad
            grp = None  # taps sharing dw share one column mask -> mask once
            for kh in range(K):
                s = (kh - pad) * W + dw
                xs = xpad_ref[:, pl.ds(pad_f + c0 + s, cw)].astype(jnp.float32)
                wt = w_ref[:, pl.ds(kh * K + kw, 1)].astype(jnp.float32)
                term = xs * wt          # (tR, cw) * (tR, 1): lane broadcast
                grp = term if grp is None else grp + term
            if dw != 0:
                grp = grp * m_ref[pl.ds(kw, 1), pl.ds(c0, cw)]  # (1, cw) bcast
            acc = grp if acc is None else acc + grp
        o_ref[:, pl.ds(c0, cw)] = acc.astype(o_ref.dtype)


def deformed_shifting(x_nchw, w_pre, w_learn, kernel_size=3):
    """Forward pass of DeformedShifting.

    x_nchw : (N, C, H, W)
    w_pre, w_learn : (C, 1, K, K)  depthwise Conv2d weights (groups=C, no bias)
    Returns (N, C, H, W) = dwconv(x, w_pre) + dwconv(x, w_learn).
    """
    N, C, H, W = x_nchw.shape
    K = kernel_size
    pad = K // 2
    NC, HW = N * C, H * W

    # Free, row-major reshape: row r = (n, c); lanes = flattened (h, w).
    x_flat = x_nchw.reshape(NC, HW)

    # Merge the two depthwise kernels (conv is linear) and expand to one
    # weight row per (n, c) row of x_flat.  Tiny arrays -> negligible HBM.
    w_merged = (w_pre + w_learn)[:, 0].reshape(C, K * K).astype(jnp.float32)
    w_rows = jnp.tile(w_merged, (N, 1))                       # (NC, K*K)

    # Column-validity masks for the K horizontal tap offsets dw = kw - pad:
    # valid iff 0 <= (f % W) + dw < W (kills wrap-around across image rows).
    col = jnp.arange(HW, dtype=jnp.int32) % W
    mask = jnp.stack(
        [((col + (kw - pad) >= 0) & (col + (kw - pad) < W)) for kw in range(K)]
    ).astype(jnp.float32)                                     # (K, HW)

    # Halo width along the flattened axis, rounded up to a full lane group so
    # the interior staging store stays lane-aligned.
    pad_f = ((pad * (W + 1) + 127) // 128) * 128 if pad > 0 else 0

    # Row tile: the largest divisor of N*C that is a multiple of 8 (or N*C
    # itself, i.e. full extent) fitting an ~8 MiB per-block VMEM budget —
    # conservative for v7x's 64 MiB VMEM / 32 MiB scoped default.
    itemsize = jnp.dtype(x_nchw.dtype).itemsize
    per_row = (2 * 2 * HW * itemsize            # double-buffered in + out blocks
               + (HW + 2 * pad_f) * itemsize    # halo staging scratch
               + 4 * HW)                        # f32 accumulator slack
    cap = max(1, (8 * 1024 * 1024) // per_row)
    candidates = [d for d in range(1, NC + 1)
                  if NC % d == 0 and (d % 8 == 0 or d == NC)]
    fitting = [d for d in candidates if d <= cap]
    t_rows = max(fitting) if fitting else min(candidates)

    kernel = functools.partial(_dw_shift_kernel, H=H, W=W, K=K, pad_f=pad_f)

    out_flat = pl.pallas_call(
        kernel,
        out_shape=jax.ShapeDtypeStruct((NC, HW), x_nchw.dtype),
        grid_spec=pltpu.PrefetchScalarGridSpec(
            num_scalar_prefetch=0,
            grid=(NC // t_rows,),
            in_specs=[
                pl.BlockSpec((t_rows, HW), lambda r: (r, 0)),
                pl.BlockSpec((t_rows, K * K), lambda r: (r, 0)),
                pl.BlockSpec((K, HW), lambda r: (0, 0)),
            ],
            out_specs=pl.BlockSpec((t_rows, HW), lambda r: (r, 0)),
            scratch_shapes=[
                pltpu.VMEM((t_rows, HW + 2 * pad_f), x_nchw.dtype),
            ],
        ),
        compiler_params=pltpu.CompilerParams(
            dimension_semantics=("parallel",),
            vmem_limit_bytes=32 * 1024 * 1024,
        ),
    )(x_flat, w_rows, mask)

    return out_flat.reshape(N, C, H, W)


def _reference(x_nchw, w_pre, w_learn):
    """Pure-JAX reference: two depthwise convs (groups=C), summed."""
    C = x_nchw.shape[1]

    def dwconv(x, w):
        # w: (C, 1, K, K) matches OIHW with feature_group_count=C.
        return lax.conv_general_dilated(
            x, w, window_strides=(1, 1), padding="SAME",
            feature_group_count=C,
            dimension_numbers=("NCHW", "OIHW", "NCHW"))

    return dwconv(x_nchw, w_pre) + dwconv(x_nchw, w_learn)


if __name__ == "__main__":
    key = jax.random.PRNGKey(0)
    k_x, k_w1, k_w2 = jax.random.split(key, 3)

    N, C, H, W = 2, 4, 16, 16
    K = 3

    x = jax.random.normal(k_x, (N, C, H, W), dtype=jnp.float32)
    # Deterministic "parameters" matching nn.Conv2d(dim, dim, 3, groups=dim).weight shape.
    w_pre = jax.random.normal(k_w1, (C, 1, K, K), dtype=jnp.float32) * 0.1
    w_learn = jax.random.normal(k_w2, (C, 1, K, K), dtype=jnp.float32) * 0.1

    out = deformed_shifting(x, w_pre, w_learn, kernel_size=K)
    out = jax.block_until_ready(out)

    ref = jax.block_until_ready(_reference(x, w_pre, w_learn))
    assert out.shape == (N, C, H, W)
    assert jnp.allclose(out, ref, atol=1e-5, rtol=1e-5), "mismatch vs reference"

    print("KERNEL_OK")
</pallas_src>

<mosaic_0001>
module attributes {stable_mosaic.version = 11 : i64} {
  func.func @_dw_shift_kernel(%arg0: i32, %arg1: memref<8x256xf32, #tpu.memory_space<vmem>>, %arg2: memref<8x9xf32, #tpu.memory_space<vmem>>, %arg3: memref<3x256xf32, #tpu.memory_space<vmem>>, %arg4: memref<8x256xf32, #tpu.memory_space<vmem>>, %arg5: memref<8x512xf32, #tpu.memory_space<vmem>>) attributes {dimension_semantics = [#tpu.dimension_semantics<parallel>], iteration_bounds = array<i64: 1>, scalar_prefetch = 0 : i64, scratch_operands = 1 : i64, tpu.core_type = #tpu.core_type<tc>, window_params = [{transform_indices = @transform_0, window_bounds = array<i64: 8, 256>}, {transform_indices = @transform_1, window_bounds = array<i64: 8, 9>}, {pipeline_mode = #tpu.pipeline_mode<synchronous>, transform_indices = @transform_2, window_bounds = array<i64: 3, 256>}, {transform_indices = @transform_3, window_bounds = array<i64: 8, 256>}]} {
    %cst = arith.constant 0.000000e+00 : f32
    %0 = vector.broadcast %cst : f32 to vector<8x128xf32>
    %c0 = arith.constant 0 : index
    %c0_0 = arith.constant 0 : index
    %1 = vector.load %arg5[%c0, %c0_0] : memref<8x512xf32, #tpu.memory_space<vmem>>, vector<8x128xf32>
    tpu.vector_store %arg5[%c0, %c0_0], %0 {strides = array<i32>} : memref<8x512xf32, #tpu.memory_space<vmem>>, vector<8x128xf32>,
    %c0_1 = arith.constant 0 : index
    %c384 = arith.constant 384 : index
    %2 = vector.load %arg5[%c0_1, %c384] : memref<8x512xf32, #tpu.memory_space<vmem>>, vector<8x128xf32>
    tpu.vector_store %arg5[%c0_1, %c384], %0 {strides = array<i32>} : memref<8x512xf32, #tpu.memory_space<vmem>>, vector<8x128xf32>,
    %c0_2 = arith.constant 0 : index
    %c0_3 = arith.constant 0 : index
    %3 = vector.load %arg1[%c0_2, %c0_3] : memref<8x256xf32, #tpu.memory_space<vmem>>, vector<8x256xf32>
    %c0_4 = arith.constant 0 : index
    %c128 = arith.constant 128 : index
    %4 = vector.load %arg5[%c0_4, %c128] : memref<8x512xf32, #tpu.memory_space<vmem>>, vector<8x256xf32>
    tpu.vector_store %arg5[%c0_4, %c128], %3 {strides = array<i32>} : memref<8x512xf32, #tpu.memory_space<vmem>>, vector<8x256xf32>,
    %c0_5 = arith.constant 0 : index
    %c111 = arith.constant 111 : index
    %5 = vector.load %arg5[%c0_5, %c111] : memref<8x512xf32, #tpu.memory_space<vmem>>, vector<8x256xf32>
    %c0_6 = arith.constant 0 : index
    %c0_7 = arith.constant 0 : index
    %6 = vector.load %arg2[%c0_6, %c0_7] : memref<8x9xf32, #tpu.memory_space<vmem>>, vector<8x1xf32>
    %7 = vector.broadcast %6 : vector<8x1xf32> to vector<8x256xf32>
    %8 = arith.mulf %5, %7 : vector<8x256xf32>
    %c0_8 = arith.constant 0 : index
    %c127 = arith.constant 127 : index
    %9 = vector.load %arg5[%c0_8, %c127] : memref<8x512xf32, #tpu.memory_space<vmem>>, vector<8x256xf32>
    %c0_9 = arith.constant 0 : index
    %c3 = arith.constant 3 : index
    %10 = vector.load %arg2[%c0_9, %c3] : memref<8x9xf32, #tpu.memory_space<vmem>>, vector<8x1xf32>
    %11 = vector.broadcast %10 : vector<8x1xf32> to vector<8x256xf32>
    %12 = arith.mulf %9, %11 : vector<8x256xf32>
    %13 = arith.addf %8, %12 : vector<8x256xf32>
    %c0_10 = arith.constant 0 : index
    %c143 = arith.constant 143 : index
    %14 = vector.load %arg5[%c0_10, %c143] : memref<8x512xf32, #tpu.memory_space<vmem>>, vector<8x256xf32>
    %c0_11 = arith.constant 0 : index
    %c6 = arith.constant 6 : index
    %15 = vector.load %arg2[%c0_11, %c6] : memref<8x9xf32, #tpu.memory_space<vmem>>, vector<8x1xf32>
    %16 = vector.broadcast %15 : vector<8x1xf32> to vector<8x256xf32>
    %17 = arith.mulf %14, %16 : vector<8x256xf32>
    %18 = arith.addf %13, %17 : vector<8x256xf32>
    %c0_12 = arith.constant 0 : index
    %c0_13 = arith.constant 0 : index
    %19 = vector.load %arg3[%c0_12, %c0_13] : memref<3x256xf32, #tpu.memory_space<vmem>>, vector<1x256xf32>
    %20 = vector.broadcast %19 : vector<1x256xf32> to vector<8x256xf32>
    %21 = arith.mulf %18, %20 : vector<8x256xf32>
    %c0_14 = arith.constant 0 : index
    %c112 = arith.constant 112 : index
    %22 = vector.load %arg5[%c0_14, %c112] : memref<8x512xf32, #tpu.memory_space<vmem>>, vector<8x256xf32>
    %c0_15 = arith.constant 0 : index
    %c1 = arith.constant 1 : index
    %23 = vector.load %arg2[%c0_15, %c1] : memref<8x9xf32, #tpu.memory_space<vmem>>, vector<8x1xf32>
    %24 = vector.broadcast %23 : vector<8x1xf32> to vector<8x256xf32>
    %25 = arith.mulf %22, %24 : vector<8x256xf32>
    %c0_16 = arith.constant 0 : index
    %c128_17 = arith.constant 128 : index
    %26 = vector.load %arg5[%c0_16, %c128_17] : memref<8x512xf32, #tpu.memory_space<vmem>>, vector<8x256xf32>
    %c0_18 = arith.constant 0 : index
    %c4 = arith.constant 4 : index
    %27 = vector.load %arg2[%c0_18, %c4] : memref<8x9xf32, #tpu.memory_space<vmem>>, vector<8x1xf32>
    %28 = vector.broadcast %27 : vector<8x1xf32> to vector<8x256xf32>
    %29 = arith.mulf %26, %28 : vector<8x256xf32>
    %30 = arith.addf %25, %29 : vector<8x256xf32>
    %c0_19 = arith.constant 0 : index
    %c144 = arith.constant 144 : index
    %31 = vector.load %arg5[%c0_19, %c144] : memref<8x512xf32, #tpu.memory_space<vmem>>, vector<8x256xf32>
    %c0_20 = arith.constant 0 : index
    %c7 = arith.constant 7 : index
    %32 = vector.load %arg2[%c0_20, %c7] : memref<8x9xf32, #tpu.memory_space<vmem>>, vector<8x1xf32>
    %33 = vector.broadcast %32 : vector<8x1xf32> to vector<8x256xf32>
    %34 = arith.mulf %31, %33 : vector<8x256xf32>
    %35 = arith.addf %30, %34 : vector<8x256xf32>
    %36 = arith.addf %21, %35 : vector<8x256xf32>
    %c0_21 = arith.constant 0 : index
    %c113 = arith.constant 113 : index
    %37 = vector.load %arg5[%c0_21, %c113] : memref<8x512xf32, #tpu.memory_space<vmem>>, vector<8x256xf32>
    %c0_22 = arith.constant 0 : index
    %c2 = arith.constant 2 : index
    %38 = vector.load %arg2[%c0_22, %c2] : memref<8x9xf32, #tpu.memory_space<vmem>>, vector<8x1xf32>
    %39 = vector.broadcast %38 : vector<8x1xf32> to vector<8x256xf32>
    %40 = arith.mulf %37, %39 : vector<8x256xf32>
    %c0_23 = arith.constant 0 : index
    %c129 = arith.constant 129 : index
    %41 = vector.load %arg5[%c0_23, %c129] : memref<8x512xf32, #tpu.memory_space<vmem>>, vector<8x256xf32>
    %c0_24 = arith.constant 0 : index
    %c5 = arith.constant 5 : index
    %42 = vector.load %arg2[%c0_24, %c5] : memref<8x9xf32, #tpu.memory_space<vmem>>, vector<8x1xf32>
    %43 = vector.broadcast %42 : vector<8x1xf32> to vector<8x256xf32>
    %44 = arith.mulf %41, %43 : vector<8x256xf32>
    %45 = arith.addf %40, %44 : vector<8x256xf32>
    %c0_25 = arith.constant 0 : index
    %c145 = arith.constant 145 : index
    %46 = vector.load %arg5[%c0_25, %c145] : memref<8x512xf32, #tpu.memory_space<vmem>>, vector<8x256xf32>
    %c0_26 = arith.constant 0 : index
    %c8 = arith.constant 8 : index
    %47 = vector.load %arg2[%c0_26, %c8] : memref<8x9xf32, #tpu.memory_space<vmem>>, vector<8x1xf32>
    %48 = vector.broadcast %47 : vector<8x1xf32> to vector<8x256xf32>
    %49 = arith.mulf %46, %48 : vector<8x256xf32>
    %50 = arith.addf %45, %49 : vector<8x256xf32>
    %c2_27 = arith.constant 2 : index
    %c0_28 = arith.constant 0 : index
    %51 = vector.load %arg3[%c2_27, %c0_28] : memref<3x256xf32, #tpu.memory_space<vmem>>, vector<1x256xf32>
    %52 = vector.broadcast %51 : vector<1x256xf32> to vector<8x256xf32>
    %53 = arith.mulf %50, %52 : vector<8x256xf32>
    %54 = arith.addf %36, %53 : vector<8x256xf32>
    %c0_29 = arith.constant 0 : index
    %c0_30 = arith.constant 0 : index
    %55 = vector.load %arg4[%c0_29, %c0_30] : memref<8x256xf32, #tpu.memory_space<vmem>>, vector<8x256xf32>
    tpu.vector_store %arg4[%c0_29, %c0_30], %54 {strides = array<i32>} : memref<8x256xf32, #tpu.memory_space<vmem>>, vector<8x256xf32>,
    return
  }
  func.func @transform_0(%arg0: i32) -> (i32, i32) {
    %c0_i32 = arith.constant 0 : i32
    %c0_i32_0 = arith.constant 0 : i32
    return %arg0, %c0_i32 : i32, i32
  }
  func.func @transform_1(%arg0: i32) -> (i32, i32) {
    %c0_i32 = arith.constant 0 : i32
    %c0_i32_0 = arith.constant 0 : i32
    return %arg0, %c0_i32 : i32, i32
  }
  func.func @transform_2(%arg0: i32) -> (i32, i32) {
    %c0_i32 = arith.constant 0 : i32
    %c0_i32_0 = arith.constant 0 : i32
    %c0_i32_1 = arith.constant 0 : i32
    return %c0_i32, %c0_i32_0 : i32, i32
  }
  func.func @transform_3(%arg0: i32) -> (i32, i32) {
    %c0_i32 = arith.constant 0 : i32
    %c0_i32_0 = arith.constant 0 : i32
    return %arg0, %c0_i32 : i32, i32
  }
}

</mosaic_0001>

<bundles_post_ra>
// kernel: tpu_custom_call.1
= control target key start
LH: loop header
LB: loop body
LE: loop exit
PB: predicated region body
PF: predicated region fallthrough
CT: control target
= control target key end

     0   :  { %8 = vsyncpa [#allocation4], 0  ;;  %s568_s0 = inlined_call_operand.hbm [shape: f32[8,256], index: 0, kind: input, shape index: {}]   ;;  %s569_s1 = inlined_call_operand.hbm [shape: f32[8,9], index: 1, kind: input, shape index: {}]   ;;  %s570_s2 = inlined_call_operand.hbm [shape: f32[3,256], index: 2, kind: input, shape index: {}]   ;;  %s571_s3 = inlined_call_operand.hbm [shape: f32[8,256], index: 3, kind: output, shape index: {}]  }
   0x1   :  { %9 = vsyncpa [#allocation7], 0 }
   0x2   :  { %10 = vsyncpa [#allocation5], 0  ;;  %s455_s12 = smov [#allocation6]   ;;  %s456_s14 = smov [#allocation3]  }
   0x3   :  { %s27_s13 = sshll.u32 %s455_s12, 4  ;;  %s17_s15 = sshll.u32 %s456_s14, 4  ;;  %s28_s13 = int_to_ptr.vmem [resolvable:$true] %s27_s13  ;;  %s18_s15 = int_to_ptr.vmem [resolvable:$true] %s17_s15 }
   0x4   :  { %s377_s16 = scalar_lea.vmem %s28_s13, 128  ;;  %p382_p1 = scmp.lt.s32.totalorder %s28_s13, %s28_s13 }
   0x5   :  { %p378_p0 = scmp.ne.s32.totalorder %s28_s13, %s377_s16  ;;  %p383_p2 = scmp.lt.s32.totalorder %s377_s16, %s377_s16 }
   0x7   :  { %p384_p3 = por %p383_p2, %p382_p1 }
   0x9   :  { %p385_p4 = pnand %p384_p3, %p378_p0 }
   0xb   :  { %388 = shalt.err (!%p385_p4)
}
   0xc   :  { %30 = dma.hbm_to_vmem [thread:$0]  %s569_s1, 128, %s28_s13, [#allocation7]  }
   0xd   :  { %s397_s19 = scalar_lea.vmem %s18_s15, 256  ;;  %p402_p6 = scmp.lt.s32.totalorder %s18_s15, %s18_s15 }
   0xe   :  { %p398_p5 = scmp.ne.s32.totalorder %s18_s15, %s397_s19  ;;  %p403_p7 = scmp.lt.s32.totalorder %s397_s19, %s397_s19 }
  0x10   :  { %p404_p8 = por %p403_p7, %p402_p6 }
  0x12   :  { %p405_p9 = pnand %p404_p8, %p398_p5 }
  0x14   :  { %408 = shalt.err (!%p405_p9)
}
  0x15   :  { %20 = dma.hbm_to_vmem [thread:$0]  %s568_s0, 256, %s18_s15, [#allocation4]  }
  0x16   :  { %s457_s22 = smov [#allocation8]  }
  0x17   :  { %s37_s23 = sshll.u32 %s457_s22, 4  ;;  %s38_s23 = int_to_ptr.vmem [resolvable:$true] %s37_s23 }
  0x18   :  { %s417_s24 = scalar_lea.vmem %s38_s23, 128  ;;  %p422_p11 = scmp.lt.s32.totalorder %s38_s23, %s38_s23 }
  0x19   :  { %p418_p10 = scmp.ne.s32.totalorder %s38_s23, %s417_s24  ;;  %p423_p12 = scmp.lt.s32.totalorder %s417_s24, %s417_s24 }
  0x1b   :  { %p424_p13 = por %p423_p12, %p422_p11 }
  0x1d   :  { %p425_p0 = pnand %p424_p13, %p418_p10 }
  0x1f   :  { %428 = shalt.err (!%p425_p0)
}
  0x20   :  { %40 = dma.hbm_to_vmem [thread:$0]  %s570_s2, 128, %s38_s23, [#allocation7]  }
  0x21   :  { %449 = dma.done.wait [#allocation4], 256  }
  0x22   :  { %450 = vsyncadd [#allocation4], 4294967040 }
  0x23   :  { %451 = dma.done.wait [#allocation7], 256  }
  0x24   :  { %452 = vsyncadd [#allocation7], 4294967040  ;;  %v458_v0 = vmov 4   ;;  %v459_v1 = vmov 7   ;;  %v504_v2 = vld [vmem:[#allocation6] sm:$0xff]  ;;  %v460_v3 = vmov 5   ;;  %v123_v20 = vlaneseq }
  0x25   :  { %359 = vset.pattern.permute.xlu0 %v458_v0  ;;  %361 = vset.pattern.permute.xlu1 %v459_v1  ;;  %v461_v4 = vmov 8   ;;  %v462_v5 = vmov 3   ;;  %v463_v6 = vmov 6   ;;  %v464_v7 = vmov 1   ;;  %v514_v10 = vld [vmem:[#allocation3] sm:$0xff]  ;;  %v516_v11 = vld [vmem:[#allocation3 + $0x8] sm:$0xff] }
  0x26   :  { %151 = vperm.xlu0 %359, %v504_v2   ;;  %170 = vperm.xlu1 %361, %v504_v2   ;;  %v465_v8 = vmov 2   ;;  %v466_v9 = vmov 0   ;;  %s467_s0 = smov 112   ;;  %s468_s2 = smov 96   ;;  %v124_v24 = vshrl.u32 %v123_v20, 7  ;;  %vm84_vm0 = vcmask 916480  }
  0x27   :  { %v267_v29 = vld [vmem:[#allocation8 + $0x2] ss:$4 sm:$0x3]  ;;  %s469_s26 = smov 113   ;;  %s470_s27 = smov 111   ;;  %vm112_vm1 = vcmask 785408  }
  0x28   :  { %v125_v28 = vsub.s32 0, %v124_v24  ;;  %v129_v31 = vsub.s32 1, %v124_v24  ;;  %v121_v34 = vld [vmem:[#allocation8] ss:$4 sm:$0x3]  ;;  %s471_s28 = smov 127  }
  0x29   :  { %vm281_vm2 = vcmask 924672   ;;  %s472_s29 = smov 126   ;;  %vm135_vm3 = vcmask 908288   ;;  %vm202_vm4 = vcmask 1039360   ;;  %vm298_vm5 = vcmask 1031168   ;;  %s473_s30 = smov 17  }
  0x2a   :  { %360 = vset.pattern.permute.xlu0 %v460_v3  ;;  %362 = vset.pattern.permute.xlu1 %v461_v4  ;;  %v272_v30 = vrot.slane %v267_v29, %v125_v28  ;;  %v276_v33 = vrot.slane %v267_v29, %v129_v31  ;;  %v130_v35 = vrot.slane %v121_v34, %v129_v31  ;;  %vm316_vm6 = vcmask 138240   ;;  %s474_s4 = smov [#allocation9]  }
  0x2b   :  { %219 = vperm.xlu0 %360, %v504_v2   ;;  %243 = vperm.xlu1 %362, %v504_v2   ;;  %v126_v36 = vrot.slane %v121_v34, %v125_v28  ;;  %s329_s5 = sshll.u32 %s474_s4, 4  ;;  %s330_s5 = int_to_ptr.vmem [resolvable:$true] %s329_s5 }
  0x2c   :  { %s429_s6 = scalar_lea.vmem %s330_s5, 256  ;;  %p434_p2 = scmp.lt.s32.totalorder %s330_s5, %s330_s5 }
  0x2d   :  { %p430_p1 = scmp.ne.s32.totalorder %s330_s5, %s429_s6  ;;  %p435_p3 = scmp.lt.s32.totalorder %s429_s6, %s429_s6 }
  0x2f   :  { %363 = vset.pattern.permute.xlu1 %v462_v5  ;;  %364 = vset.pattern.permute.xlu0 %v463_v6  ;;  %p436_p4 = por %p435_p3, %p434_p2 }
  0x30   :  { %69 = vperm.xlu1 %363, %v504_v2   ;;  %97 = vperm.xlu0 %364, %v504_v2  }
  0x31   :  { %p437_p5 = pnand %p436_p4, %p430_p1 }
  0x34   :  { %365 = vset.pattern.permute.xlu1 %v464_v7  ;;  %368 = vset.pattern.permute.xlu0 %v461_v4 }
  0x35   :  { %144 = vperm.xlu1 %365, %v504_v2  }
  0x39   :  { %366 = vset.pattern.permute.xlu1 %v465_v8 }
  0x3a   :  { %212 = vperm.xlu1 %366, %v504_v2  }
  0x3e   :  { %367 = vset.pattern.permute.xlu1 %v466_v9 }
  0xa1   :  { %v152_v12 = vpop.permute.xlu0 %151  ;;  %v171_v16 = vpop.permute.xlu1 %170 }
  0xa2   :  { %v154_v13 = vmul.f32 %v152_v12, %v514_v10  ;;  %v155_v14 = vmul.f32 %v152_v12, %v516_v11  ;;  %v173_v19 = vmul.f32 %v171_v16, %v514_v10  ;;  %v174_v22 = vmul.f32 %v171_v16, %v516_v11 }
  0xa3   :  { %v175_v23 = vmul.f32 0.0, %v171_v16 }
  0xa4   :  { %160 = vrot.lane.b32.xlu1 %v155_v14, %s467_s0  ;;  %158 = vrot.lane.b32.xlu0 %v154_v13, %s467_s0 }
  0xa6   :  { %v220_v15 = vpop.permute.xlu0 %219  ;;  %v244_v25 = vpop.permute.xlu1 %243 }
  0xa7   :  { %v222_v17 = vmul.f32 %v220_v15, %v514_v10  ;;  %v223_v18 = vmul.f32 %v220_v15, %v516_v11  ;;  %v224_v21 = vmul.f32 0.0, %v220_v15  ;;  %v246_v26 = vmul.f32 %v244_v25, %v514_v10 }
  0xa8   :  { %v247_v27 = vmul.f32 %v244_v25, %v516_v11  ;;  %v248_v32 = vmul.f32 0.0, %v244_v25 }
  0xa9   :  { %230 = vrot.lane.b32.xlu1 %v223_v18, %s467_s0  ;;  %228 = vrot.lane.b32.xlu0 %v222_v17, %s467_s0 }
  0xab   :  { %v70_v37 = vpop.permute.xlu1 %69  ;;  %v98_v40 = vpop.permute.xlu0 %97 }
  0xac   :  { %v72_v38 = vmul.f32 0.0, %v70_v37  ;;  %v73_v39 = vmul.f32 %v70_v37, %v514_v10  ;;  %v74_v41 = vmul.f32 %v70_v37, %v516_v11  ;;  %v100_v42 = vmul.f32 %v98_v40, %v514_v10 }
  0xad   :  { %179 = vrot.lane.b32.xlu1 %v173_v19, %s468_s2  ;;  %232 = vrot.lane.b32.xlu0 %v224_v21, %s467_s0  ;;  %v101_v43 = vmul.f32 %v98_v40, %v516_v11  ;;  %v102_v44 = vmul.f32 0.0, %v98_v40 }
  0xb0   :  { %v145_v45 = vpop.permute.xlu1 %144 }
  0xb1   :  { %183 = vrot.lane.b32.xlu1 %v175_v23, %s468_s2  ;;  %181 = vrot.lane.b32.xlu0 %v174_v22, %s468_s2  ;;  %v147_v51 = vmul.f32 0.0, %v145_v45  ;;  %v148_v57 = vmul.f32 %v145_v45, %v514_v10  ;;  %v149_v58 = vmul.f32 %v145_v45, %v516_v11 }
  0xb5   :  { %254 = vrot.lane.b32.xlu1 %v247_v27, %s468_s2  ;;  %252 = vrot.lane.b32.xlu0 %v246_v26, %s468_s2  ;;  %v213_v46 = vpop.permute.xlu1 %212 }
  0xb6   :  { %v215_v3 = vmul.f32 0.0, %v213_v46  ;;  %v217_v8 = vmul.f32 %v213_v46, %v516_v11  ;;  %v216_v13 = vmul.f32 %v213_v46, %v514_v10 }
  0xb9   :  { %277 = vrot.lane.b32.xlu1 %v272_v30, %s469_s26  ;;  %256 = vrot.lane.b32.xlu0 %v248_v32, %s468_s2 }
  0xbd   :  { %279 = vrot.lane.b32.xlu0 %v276_v33, %s469_s26  ;;  %62 = vperm.xlu1 %367, %v504_v2  }
  0xc1   :  { %133 = vrot.lane.b32.xlu1 %v130_v35, %s470_s27  ;;  %131 = vrot.lane.b32.xlu0 %v126_v36, %s470_s27 }
  0xc5   :  { %78 = vrot.lane.b32.xlu0 %v72_v38, %s467_s0  ;;  %80 = vrot.lane.b32.xlu1 %v73_v39, %s467_s0 }
  0xc9   :  { %82 = vrot.lane.b32.xlu0 %v74_v41, %s467_s0  ;;  %106 = vrot.lane.b32.xlu1 %v100_v42, %s468_s2 }
  0xcd   :  { %108 = vrot.lane.b32.xlu0 %v101_v43, %s468_s2  ;;  %110 = vrot.lane.b32.xlu1 %v102_v44, %s468_s2 }
 0x116   :  { %v161_v47 = vpop.permute.xlu1 %160  ;;  %v159_v48 = vpop.permute.xlu0 %158 }
 0x117   :  { %v166_v52 = vadd.f32 %v159_v48, %v147_v51  ;;  %v162_v55 = vsel %vm84_vm0, %v159_v48, %v161_v47  ;;  %v168_v59 = vadd.f32 %v161_v47, %v149_v58 }
 0x118   :  { %v167_v60 = vadd.f32 %v162_v55, %v148_v57 }
 0x11b   :  { %v231_v49 = vpop.permute.xlu1 %230  ;;  %v229_v50 = vpop.permute.xlu0 %228 }
 0x11c   :  { %v239_v6 = vadd.f32 %v229_v50, %v215_v3  ;;  %v234_v9 = vsel %vm84_vm0, %v229_v50, %v231_v49 }
 0x11d   :  { %v240_v20 = vadd.f32 %v234_v9, %v216_v13 }
 0x11f   :  { %v180_v53 = vpop.permute.xlu1 %179  ;;  %v233_v54 = vpop.permute.xlu0 %232 }
 0x120   :  { %v190_v56 = vadd.f32 %v180_v53, %v166_v52  ;;  %v235_v7 = vsel %vm84_vm0, %v231_v49, %v233_v54 }
 0x121   :  { %v241_v14 = vadd.f32 %v235_v7, %v217_v8 }
 0x122   :  { %196 = vrot.lane.b32.xlu0 %v190_v56, %s471_s28 }
 0x123   :  { %v184_v61 = vpop.permute.xlu1 %183  ;;  %v182_v62 = vpop.permute.xlu0 %181 }
 0x124   :  { %v185_v63 = vsel %vm112_vm1, %v180_v53, %v182_v62  ;;  %v186_v0 = vsel %vm112_vm1, %v182_v62, %v184_v61 }
 0x125   :  { %v191_v1 = vadd.f32 %v185_v63, %v167_v60  ;;  %v192_v2 = vadd.f32 %v186_v0, %v168_v59 }
 0x127   :  { %v255_v4 = vpop.permute.xlu1 %254  ;;  %200 = vrot.lane.b32.xlu0 %v192_v2, %s471_s28  ;;  %v253_v5 = vpop.permute.xlu0 %252  ;;  %198 = vrot.lane.b32.xlu1 %v191_v1, %s471_s28 }
 0x128   :  { %v263_v12 = vadd.f32 %v253_v5, %v239_v6  ;;  %v258_v17 = vsel %vm112_vm1, %v253_v5, %v255_v4 }
 0x129   :  { %v264_v22 = vadd.f32 %v258_v17, %v240_v20 }
 0x12b   :  { %v278_v15 = vpop.permute.xlu1 %277  ;;  %v257_v16 = vpop.permute.xlu0 %256 }
 0x12c   :  { %v286_v18 = vmul.f32 %v278_v15, %v263_v12  ;;  %v259_v19 = vsel %vm112_vm1, %v255_v4, %v257_v16 }
 0x12d   :  { %v265_v21 = vadd.f32 %v259_v19, %v241_v14 }
 0x12e   :  { %292 = vrot.lane.b32.xlu1 %v286_v18, %s472_s29 }
 0x12f   :  { %v280_v23 = vpop.permute.xlu0 %279 }
 0x130   :  { %v282_v24 = vsel %vm281_vm2, %v278_v15, %v280_v23  ;;  %v288_v25 = vmul.f32 %v280_v23, %v265_v21 }
 0x131   :  { %v287_v26 = vmul.f32 %v282_v24, %v264_v22 }
 0x132   :  { %296 = vrot.lane.b32.xlu1 %v288_v25, %s472_s29 }
 0x133   :  { %294 = vrot.lane.b32.xlu0 %v287_v26, %s472_s29  ;;  %v132_v27 = vpop.permute.xlu0 %131 }
 0x137   :  { %v79_v28 = vpop.permute.xlu0 %78 }
 0x138   :  { %v63_v29 = vpop.permute.xlu1 %62 }
 0x139   :  { %v66_v32 = vmul.f32 %v63_v29, %v514_v10  ;;  %v65_v40 = vmul.f32 0.0, %v63_v29  ;;  %v67_v44 = vmul.f32 %v63_v29, %v516_v11 }
 0x13b   :  { %v83_v31 = vpop.permute.xlu0 %82 }
 0x13c   :  { %v134_v30 = vpop.permute.xlu1 %133  ;;  %v92_v10 = vadd.f32 %v83_v31, %v67_v44 }
 0x13d   :  { %v136_v49 = vsel %vm135_vm3, %v132_v27, %v134_v30 }
 0x13f   :  { %v109_v36 = vpop.permute.xlu0 %108 }
 0x140   :  { %v81_v33 = vpop.permute.xlu1 %80 }
 0x141   :  { %v86_v34 = vsel %vm84_vm0, %v81_v33, %v83_v31  ;;  %v85_v41 = vsel %vm84_vm0, %v79_v28, %v81_v33 }
 0x142   :  { %v91_v35 = vadd.f32 %v86_v34, %v66_v32  ;;  %v90_v45 = vadd.f32 %v85_v41, %v65_v40 }
 0x144   :  { %v107_v37 = vpop.permute.xlu1 %106 }
 0x145   :  { %v113_v38 = vsel %vm112_vm1, %v107_v37, %v109_v36  ;;  %v118_v47 = vadd.f32 %v107_v37, %v90_v45 }
 0x146   :  { %v119_v39 = vadd.f32 %v113_v38, %v91_v35 }
 0x147   :  { %v140_v54 = vmul.f32 %v132_v27, %v118_v47 }
 0x148   :  { %v111_v42 = vpop.permute.xlu1 %110  ;;  %v141_v56 = vmul.f32 %v136_v49, %v119_v39 }
 0x149   :  { %v114_v50 = vsel %vm112_vm1, %v109_v36, %v111_v42 }
 0x14a   :  { %v120_v55 = vadd.f32 %v114_v50, %v92_v10 }
 0x14c   :  { %v142_v62 = vmul.f32 %v134_v30, %v120_v55 }
 0x194   :  { %v197_v43 = vpop.permute.xlu0 %196 }
 0x199   :  { %v199_v46 = vpop.permute.xlu1 %198  ;;  %v201_v48 = vpop.permute.xlu0 %200 }
 0x19a   :  { %v203_v52 = vsel %vm202_vm4, %v197_v43, %v199_v46  ;;  %v204_v53 = vsel %vm202_vm4, %v199_v46, %v201_v48  ;;  %v210_v1 = vadd.f32 %v201_v48, %v142_v62 }
 0x19b   :  { %v208_v58 = vadd.f32 %v203_v52, %v140_v54  ;;  %v209_v11 = vadd.f32 %v204_v53, %v141_v56 }
 0x1a0   :  { %v293_v51 = vpop.permute.xlu1 %292 }
 0x1a4   :  { %v297_v57 = vpop.permute.xlu1 %296 }
 0x1a5   :  { %v295_v59 = vpop.permute.xlu0 %294  ;;  %v306_v2 = vadd.f32 %v297_v57, %v210_v1 }
 0x1a6   :  { %v299_v60 = vsel %vm298_vm5, %v293_v51, %v295_v59  ;;  %v300_v61 = vsel %vm298_vm5, %v295_v59, %v297_v57 }
 0x1a7   :  { %v304_v63 = vadd.f32 %v299_v60, %v208_v58  ;;  %v305_v0 = vadd.f32 %v300_v61, %v209_v11 }
 0x1a9   :  { %310 = vrot.lane.b32.xlu0 %v304_v63, %s473_s30  ;;  %312 = vrot.lane.b32.xlu1 %v305_v0, %s473_s30 }
 0x1ad   :  { %314 = vrot.lane.b32.xlu0 %v306_v2, %s473_s30 }
 0x21b   :  { %v311_v3 = vpop.permute.xlu0 %310  ;;  %v313_v4 = vpop.permute.xlu1 %312 }
 0x21c   :  { %v317_v5 = vsel %vm316_vm6, %v311_v3, %v313_v4 }
 0x21d   :  { %321 = vst [vmem:[#allocation9] sm:$0xff] %v317_v5 }
 0x21f   :  { %v315_v6 = vpop.permute.xlu0 %314 }
 0x220   :  { %v318_v7 = vsel %vm316_vm6, %v313_v4, %v315_v6 }
 0x221   :  { %322 = vst [vmem:[#allocation9 + $0x8] sm:$0xff] %v318_v7 }
 0x222   :  { %440 = shalt.err (!%p437_p5)
}
 0x223   :  { %332 = dma.vmem_to_hbm [thread:$0]  %s330_s5, 256, %s571_s3, [#allocation5]  }
 0x224   :  { %453 = dma.done.wait [#allocation5], 256  }
 0x225   :  { %454 = vsyncadd [#allocation5], 4294967040 }
 0x226   :  { %336 = vsyncpa [#allocation4], 1 }
 0x227   :  { %337 = vsyncpa [#allocation7], 1 }
 0x228   :  { %338 = vsyncpa [#allocation5], 1 }

</bundles_post_ra>
